<compile_context>
chip_gen: v7x
topology: tpu7x:2x2x1
jax: 0.10.0
libtpu: 0.0.40
codegen_flags: <defaults>
</compile_context>

<pallas_src>
import math

import jax
import jax.numpy as jnp
from jax import lax
from jax.experimental import pallas as pl
from jax.experimental.pallas import tpu as pltpu

_LANE = 128
_TARGET_BLOCK_ELEMS = 1 << 20        # ~1M elements per input block
_VMEM_LIMIT_BYTES = 48 * 1024 * 1024  # safe on v5e/v6e (128 MiB) and v7x (64 MiB)


def _make_sse_kernel(b_tile, r_chunk, r_total, group, needs_tail_mask):
    """Kernel accumulating per-batch (group, 128) partial sums of (x - y)^2."""
    grouped = (r_chunk >= group) and (r_chunk % group == 0)
    n_groups = r_chunk // group if grouped else 0

    def kernel(x_ref, y_ref, out_ref):
        ci = pl.program_id(1)

        @pl.when(ci == 0)
        def _():
            out_ref[...] = jnp.zeros_like(out_ref)

        if grouped:
            row0 = ci * r_chunk

            def body(g, acc):
                start = pl.multiple_of(g * group, group)
                xs = x_ref[:, pl.ds(start, group), :].astype(jnp.float32)
                ys = y_ref[:, pl.ds(start, group), :].astype(jnp.float32)
                d = xs - ys
                if needs_tail_mask:
                    # Zero rows beyond the valid reduction extent (edge-block
                    # padding values are unspecified; `where` kills NaN/Inf).
                    rows = (row0 + start
                            + lax.broadcasted_iota(jnp.int32, (1, group, 1), 1))
                    d = jnp.where(rows < r_total, d, jnp.float32(0.0))
                return acc + d * d

            acc = lax.fori_loop(
                0, n_groups, body,
                jnp.zeros((b_tile, group, _LANE), jnp.float32),
                unroll=min(n_groups, 8))
            out_ref[...] += acc
        else:
            # Single full-extent chunk whose row count is not a multiple of
            # `group` (only possible when n_chunks == 1 -> no tail masking).
            d = x_ref[...].astype(jnp.float32) - y_ref[...].astype(jnp.float32)
            out_ref[:, 0:1, :] += jnp.sum(d * d, axis=1, keepdims=True)

    return kernel


def masked_mse_loss(x, y, m):
    """x, y: (B, ...) arrays; m: (B,) or (B, 1) mask.  Returns scalar f32."""
    B = x.shape[0]
    d_last = x.shape[-1]
    n_flat = math.prod(x.shape[1:])

    itemsize = max(jnp.dtype(x.dtype).itemsize, jnp.dtype(y.dtype).itemsize)
    group = max(8, 32 // itemsize)           # sublane packing multiple

    # ---- lane-dense (B, R, 128) view; pad-free on the common path ----
    R = pl.cdiv(n_flat, _LANE)
    xf = jnp.reshape(x, (B, n_flat))
    yf = jnp.reshape(y, (B, n_flat))
    if n_flat % _LANE != 0:
        # TODO(synk): ragged lane tail still materializes a padded copy; the
        # padded zeros contribute exactly 0 to the squared error.
        pad = R * _LANE - n_flat
        xf = jnp.pad(xf, ((0, 0), (0, pad)))
        yf = jnp.pad(yf, ((0, 0), (0, pad)))
    x3 = jnp.reshape(xf, (B, R, _LANE))
    y3 = jnp.reshape(yf, (B, R, _LANE))

    # ---- batch tiling: >= 2 parallel tiles whenever B >= 2 (v7x dual-TC) ----
    if B <= 1:
        b_tile = 1
    elif B <= 16:
        b_tile = pl.cdiv(B, 2)
    else:
        b_tile = 8
    n_btiles = pl.cdiv(B, b_tile)
    b_out = n_btiles * b_tile

    # ---- reduction-dim chunking ----
    rows_target = max(group,
                      (_TARGET_BLOCK_ELEMS // (b_tile * _LANE)) // group * group)
    r_chunk = R if R <= rows_target else rows_target
    n_chunks = pl.cdiv(R, r_chunk)
    needs_mask = (R % r_chunk) != 0          # only possible when n_chunks > 1

    kernel = _make_sse_kernel(b_tile, r_chunk, R, group, needs_mask)

    n_elems = B * n_flat
    cost = pl.CostEstimate(
        flops=3 * n_elems,
        transcendentals=0,
        bytes_accessed=(x.size * jnp.dtype(x.dtype).itemsize
                        + y.size * jnp.dtype(y.dtype).itemsize
                        + b_out * group * _LANE * 4))

    partials = pl.pallas_call(
        kernel,
        out_shape=jax.ShapeDtypeStruct((b_out, group, _LANE), jnp.float32),
        grid=(n_btiles, n_chunks),
        in_specs=[
            pl.BlockSpec((b_tile, r_chunk, _LANE), lambda bi, ci: (bi, ci, 0)),
            pl.BlockSpec((b_tile, r_chunk, _LANE), lambda bi, ci: (bi, ci, 0)),
        ],
        out_specs=pl.BlockSpec((b_tile, group, _LANE), lambda bi, ci: (bi, 0, 0)),
        compiler_params=pltpu.CompilerParams(
            dimension_semantics=("parallel", "arbitrary"),
            vmem_limit_bytes=_VMEM_LIMIT_BYTES),
        cost_estimate=cost,
    )(x3, y3)

    # ---- tiny final combine on B-element vectors ----
    sse_b = jnp.sum(jnp.reshape(partials[:B], (B, group * _LANE)), axis=-1)
    t = sse_b / jnp.float32(d_last * n_flat)           # mean(.,1) after /D
    m_flat = jnp.reshape(m, (-1,)).astype(jnp.float32)  # m.squeeze()
    msum = jnp.sum(m_flat)
    div = jnp.where(msum < jnp.float32(0.5), jnp.float32(B), msum)
    return jnp.sum(t * m_flat) / div


def _reference(x, y, m):
    B = x.shape[0]
    d_last = x.shape[-1]
    t = (x - y).astype(jnp.float32) ** 2
    t = t.reshape(B, -1) / d_last
    t = jnp.mean(t, axis=1)
    msum = jnp.sum(m.astype(jnp.float32))
    div = jnp.where(msum < 0.5, jnp.float32(B), msum)
    return jnp.sum(t * jnp.reshape(m, (-1,)).astype(jnp.float32)) / div


if __name__ == "__main__":
    key = jax.random.PRNGKey(0)
    loss_fn = jax.jit(masked_mse_loss)

    # Test 1: shapes implied by the module (B=2, seq=8, hidden=32), f32.
    kx, ky, km = jax.random.split(key, 3)
    B, T, D = 2, 8, 32
    x = jax.random.normal(kx, (B, T, D), dtype=jnp.float32)
    y = jax.random.normal(ky, (B, T, D), dtype=jnp.float32)
    m = (jax.random.uniform(km, (B, 1)) > 0.3).astype(jnp.float32)
    out = loss_fn(x, y, m)
    jax.block_until_ready(out)
    ref = _reference(x, y, m)
    assert jnp.allclose(out, ref, rtol=1e-5, atol=1e-6), (out, ref)

    # Test 2: ragged batch tile + grouped-slab accumulation path.
    kx2, ky2, km2 = jax.random.split(jax.random.PRNGKey(1), 3)
    B2, T2, D2 = 3, 64, 128
    x2 = jax.random.normal(kx2, (B2, T2, D2), dtype=jnp.float32)
    y2 = jax.random.normal(ky2, (B2, T2, D2), dtype=jnp.float32)
    m2 = jnp.zeros((B2, 1), dtype=jnp.float32)   # exercises the div < 0.5 -> B fallback
    out2 = loss_fn(x2, y2, m2)
    jax.block_until_ready(out2)
    ref2 = _reference(x2, y2, m2)
    assert jnp.allclose(out2, ref2, rtol=1e-5, atol=1e-6), (out2, ref2)

    print("KERNEL_OK")
</pallas_src>

<mosaic_0001>
module attributes {stable_mosaic.version = 11 : i64} {
  func.func @kernel(%arg0: i32, %arg1: i32, %arg2: memref<1x2x128xf32, #tpu.memory_space<vmem>>, %arg3: memref<1x2x128xf32, #tpu.memory_space<vmem>>, %arg4: memref<1x8x128xf32, #tpu.memory_space<vmem>>) attributes {dimension_semantics = [#tpu.dimension_semantics<parallel>, #tpu.dimension_semantics<arbitrary>], iteration_bounds = array<i64: 2, 1>, scalar_prefetch = 0 : i64, scratch_operands = 0 : i64, tpu.core_type = #tpu.core_type<tc>, window_params = [{transform_indices = @transform_0, window_bounds = array<i64: 1, 2, 128>}, {transform_indices = @transform_1, window_bounds = array<i64: 1, 2, 128>}, {transform_indices = @transform_2, window_bounds = array<i64: 1, 8, 128>}]} {
    %c0_i32 = arith.constant 0 : i32
    %0 = arith.cmpi eq, %arg1, %c0_i32 : i32
    %1 = arith.extui %0 : i1 to i32
    %c0_i32_0 = arith.constant 0 : i32
    %2 = arith.cmpi ne, %1, %c0_i32_0 : i32
    scf.if %2 {
      %cst_12 = arith.constant 0.000000e+00 : f32
      %12 = vector.broadcast %cst_12 : f32 to vector<1x8x128xf32>
      %c0_13 = arith.constant 0 : index
      %c0_14 = arith.constant 0 : index
      %c0_15 = arith.constant 0 : index
      %13 = vector.load %arg4[%c0_13, %c0_14, %c0_15] : memref<1x8x128xf32, #tpu.memory_space<vmem>>, vector<1x8x128xf32>
      tpu.vector_store %arg4[%c0_13, %c0_14, %c0_15], %12 {strides = array<i32>} : memref<1x8x128xf32, #tpu.memory_space<vmem>>, vector<1x8x128xf32>,
    } else {
    }
    %c0 = arith.constant 0 : index
    %c0_1 = arith.constant 0 : index
    %c0_2 = arith.constant 0 : index
    %3 = vector.load %arg2[%c0, %c0_1, %c0_2] : memref<1x2x128xf32, #tpu.memory_space<vmem>>, vector<1x2x128xf32>
    %c0_3 = arith.constant 0 : index
    %c0_4 = arith.constant 0 : index
    %c0_5 = arith.constant 0 : index
    %4 = vector.load %arg3[%c0_3, %c0_4, %c0_5] : memref<1x2x128xf32, #tpu.memory_space<vmem>>, vector<1x2x128xf32>
    %5 = arith.subf %3, %4 : vector<1x2x128xf32>
    %c0_6 = arith.constant 0 : index
    %c0_7 = arith.constant 0 : index
    %c0_8 = arith.constant 0 : index
    %6 = vector.load %arg4[%c0_6, %c0_7, %c0_8] : memref<1x8x128xf32, #tpu.memory_space<vmem>>, vector<1x1x128xf32>
    %7 = arith.mulf %5, %5 : vector<1x2x128xf32>
    %cst = arith.constant dense<0.000000e+00> : vector<1x128xf32>
    %8 = vector.multi_reduction <add>, %7, %cst [1] : vector<1x2x128xf32> to vector<1x128xf32>
    %9 = vector.shape_cast %8 : vector<1x128xf32> to vector<1x1x128xf32>
    %10 = arith.addf %6, %9 : vector<1x1x128xf32>
    %c0_9 = arith.constant 0 : index
    %c0_10 = arith.constant 0 : index
    %c0_11 = arith.constant 0 : index
    %11 = vector.load %arg4[%c0_9, %c0_10, %c0_11] : memref<1x8x128xf32, #tpu.memory_space<vmem>>, vector<1x1x128xf32>
    tpu.vector_store %arg4[%c0_9, %c0_10, %c0_11], %10 {strides = array<i32>} : memref<1x8x128xf32, #tpu.memory_space<vmem>>, vector<1x1x128xf32>,
    return
  }
  func.func @transform_0(%arg0: i32, %arg1: i32) -> (i32, i32, i32) {
    %c0_i32 = arith.constant 0 : i32
    %c0_i32_0 = arith.constant 0 : i32
    return %arg0, %arg1, %c0_i32 : i32, i32, i32
  }
  func.func @transform_1(%arg0: i32, %arg1: i32) -> (i32, i32, i32) {
    %c0_i32 = arith.constant 0 : i32
    %c0_i32_0 = arith.constant 0 : i32
    return %arg0, %arg1, %c0_i32 : i32, i32, i32
  }
  func.func @transform_2(%arg0: i32, %arg1: i32) -> (i32, i32, i32) {
    %c0_i32 = arith.constant 0 : i32
    %c0_i32_0 = arith.constant 0 : i32
    %c0_i32_1 = arith.constant 0 : i32
    return %arg0, %c0_i32, %c0_i32_0 : i32, i32, i32
  }
}

</mosaic_0001>

<bundles_post_ra>
// kernel: masked_mse_loss.1
= control target key start
LH: loop header
LB: loop body
LE: loop exit
PB: predicated region body
PF: predicated region fallthrough
CT: control target
= control target key end

     0   :  { %s364_s9 = smov 0   ;;  %s366_s10 = smov 0   ;;  %s400_s0 = inlined_call_operand.vmem [shape: f32[2,2,128], index: 0, kind: input, shape index: {}]   ;;  %s401_s1 = inlined_call_operand.vmem [shape: f32[2,2,128], index: 1, kind: input, shape index: {}]   ;;  %s402_s2 = inlined_call_operand.vmem [shape: f32[2,8,128], index: 2, kind: output, shape index: {}]  }
   0x1   :  { %s368_s11 = smov 0  }
   0x2 LB: > { %s24_s12 = sadd.s32 1, %s342_s10  ;;  %p293_p0 = scmp.ge.s32.totalorder %s346_s11, 1  ;;  %s346_s11 = sphi %s368_s11, %s12_s11   ;;  %s342_s10 = sphi %s366_s10, %s404_s10   ;;  %s338_s9 = sphi %s364_s9, %s403_s9  }
   0x3   : > { %p26_p1 = scmp.ge.s32.totalorder %s24_s12, 2  ;;  %p142_p2 = scmp.lt.s32.totalorder %s346_s11, 3 }
   0x5   : > { %s406_s12 = smov (%p26_p1, %s24_s12), 0  ;;  %p143_p3 = pnand %p293_p0, %p142_p2 }
   0x6   : > { %p172_p4 = scmp.lt.s32.totalorder (!%p143_p3), %s338_s9, 1  ;;  %v348_v2 = vmov (!%p143_p3), 0.0   ;;  %vm200_vm0 = vcmask (!%p143_p3), 1041408  }
   0x7   : > { %146 = sbr.rel (%p143_p3) target bundleno = 39 (0x27), region = 28 }
   0xe   : > { %s408_s9 = smov (!%p172_p4, %s338_s9), 1 }
   0xf   : > { %s294_s13 = sshll.u32 %s408_s9, 1  ;;  %s296_s14 = sshll.u32 %s408_s9, 3 }
  0x10   : > { %s178_s17 = scalar_lea.vmem %s400_s0, %s294_s13  ;;  %s185_s20 = scalar_lea.vmem %s401_s1, %s294_s13 }
  0x11   : > { %s189_s23 = scalar_lea.vmem %s402_s2, %s296_s14  ;;  %v195_v0 = vld [vmem:[%s178_s17] sm:$0x3] }
  0x12   : > { %v196_v1 = vld [vmem:[%s185_s20] sm:$0x3]  ;;  %194 = vst [vmem:[%s189_s23] sm:$0xff] %v348_v2 }
  0x13   : > { %v197_v3 = vsub.f32 %v195_v0, %v196_v1 }
  0x15   : > { %v199_v4 = vmul.f32 %v197_v3, %v197_v3 }
  0x17   : > { %v201_v5 = vsel %vm200_vm0, %v199_v4, 0.0 }
  0x18   : > { %v202_v6 = vrot.slane %v201_v5, 4 }
  0x19   : > { %v198_v11 = vld [vmem:[%s189_s23] sm:$0x1] }
  0x1a   : > { %v203_v7 = vadd.f32 %v202_v6, %v201_v5 }
  0x1c   : > { %v204_v8 = vrot.slane %v203_v7, 2 }
  0x1e   : > { %v205_v9 = vadd.f32 %v204_v8, %v203_v7 }
  0x20   : > { %v206_v10 = vrot.slane %v205_v9, 1 }
  0x22   : > { %v207_v12 = vadd.f32 %v206_v10, %v205_v9 }
  0x24   : > { %v208_v13 = vadd.f32 %v207_v12, %v198_v11 }
  0x26   : > { %209 = vst [vmem:[%s189_s23] sm:$0x1] %v208_v13 }
  0x27 PF: > { %s12_s11 = sadd.s32 1, %s346_s11   ;;  %s403_s9 = smov %s342_s10 }
  0x28   : > { %p9_p5 = scmp.ge.s32.totalorder %s12_s11, 4   ;;  %s404_s10 = smov %s406_s12 }
  0x2a   :  { %11 = sbr.rel (!%p9_p5) target bundleno = 2 (0x2), region = 65 }

</bundles_post_ra>
